<compile_context>
chip_gen: v5e
topology: v5e:2x2
jax: 0.10.0
libtpu: 0.0.40
codegen_flags: <defaults>
</compile_context>

<pallas_src>
import jax
import jax.numpy as jnp
from jax.experimental import pallas as pl
from jax.experimental.pallas import tpu as pltpu


# ----------------------------- Pallas kernels ------------------------------ #
def _gnn_resident_kernel(a_hbm, x_hbm, w_ref, b_ref, o_hbm,
                         a_vmem, h_ref, o_tile, sem):
    """A_hat-resident fused GCN.  Grid = (layer, row_tile), both sequential.

    a_hbm : (N_pad, N_pad) bf16 A_hat in HBM (memory_space=ANY).
    x_hbm : (N_pad, 128)   bf16 features in HBM (memory_space=ANY).
    w_ref : (L, 128, 128)  bf16 weight stack (constant block index -> resident).
    b_ref : (L, 1, 128)    f32  bias stack (resident).
    o_hbm : (N_pad, 128)   f32 output in HBM (memory_space=ANY, manual DMA out).
    a_vmem: (N_pad, N_pad) bf16 single-buffer VMEM copy of A_hat.
    h_ref : (2, N_pad, 128) bf16 ping-pong activation scratch.
    o_tile: (tm, 128) f32 staging tile for the final-layer HBM write.
    sem   : (3,) DMA semaphores.
    """
    l = pl.program_id(0)                      # layer (outer, sequential)
    r = pl.program_id(1)                      # row tile (inner, sequential)
    n_layers = pl.num_programs(0)
    tm = o_tile.shape[0]

    # One-time: bring A_hat and X into VMEM (A stays resident across all layers,
    # X seeds ping-pong slot 0).  Both DMAs are issued before either wait.
    @pl.when((l == 0) & (r == 0))
    def _():
        cp_a = pltpu.make_async_copy(a_hbm, a_vmem, sem.at[0])
        cp_x = pltpu.make_async_copy(x_hbm, h_ref.at[0], sem.at[1])
        cp_a.start()
        cp_x.start()
        cp_a.wait()
        cp_x.wait()

    cur = l & 1                               # slot holding this layer's input H
    nxt = (l + 1) & 1                         # slot receiving this layer's output
    row0 = pl.multiple_of(r * tm, tm)

    # (A_rows @ H) @ W + b : both matmuls bf16 x bf16 -> f32 on the MXU;
    # bias add / ReLU stay f32 on the VPU.
    a_rows = a_vmem[pl.ds(row0, tm), :]                                # (tm, N_pad) bf16
    ah = jnp.dot(a_rows, h_ref[cur], preferred_element_type=jnp.float32)
    pre = jnp.dot(ah.astype(jnp.bfloat16), w_ref[l],
                  preferred_element_type=jnp.float32) + b_ref[l]       # (tm, 128) f32

    # ReLU'd activations feed the next layer (the last layer's write is unread).
    h_ref[nxt, pl.ds(row0, tm), :] = jnp.maximum(pre, 0.0).astype(jnp.bfloat16)

    # Only conv4 (no ReLU) materializes rows in HBM: exactly one (tm, 128) write
    # per row tile instead of one writeback per layer.
    @pl.when(l == n_layers - 1)
    def _():
        o_tile[...] = pre
        cp_o = pltpu.make_async_copy(o_tile, o_hbm.at[pl.ds(row0, tm), :], sem.at[2])
        cp_o.start()
        cp_o.wait()


def _gnn_streamed_kernel(a_ref, x_hbm, w_ref, b_ref, o_ref, h_ref, sem):
    """Streamed fallback for graphs whose A_hat does not fit VMEM.

    a_ref : (tm, N_pad) bf16 row tile of A_hat (BlockSpec-streamed; re-read from
            HBM once per layer -- unavoidable once A exceeds the VMEM budget).
    x_hbm : (N_pad, 128) bf16 features in HBM (ANY), copied once into h_ref[0].
    w_ref / b_ref : resident weight / bias stacks (constant block index).
    o_ref : (tm, 128) f32 output tile (auto-pipelined writeback; the sequential
            grid guarantees the last layer's write is what survives in HBM).
    h_ref : (2, N_pad, 128) bf16 ping-pong activation scratch.
    sem   : (1,) DMA semaphore.
    """
    l = pl.program_id(0)
    r = pl.program_id(1)
    tm = o_ref.shape[0]

    @pl.when((l == 0) & (r == 0))
    def _():
        cp_x = pltpu.make_async_copy(x_hbm, h_ref.at[0], sem.at[0])
        cp_x.start()
        cp_x.wait()

    cur = l & 1
    nxt = (l + 1) & 1
    row0 = pl.multiple_of(r * tm, tm)

    ah = jnp.dot(a_ref[...], h_ref[cur], preferred_element_type=jnp.float32)
    pre = jnp.dot(ah.astype(jnp.bfloat16), w_ref[l],
                  preferred_element_type=jnp.float32) + b_ref[l]

    h_ref[nxt, pl.ds(row0, tm), :] = jnp.maximum(pre, 0.0).astype(jnp.bfloat16)
    o_ref[...] = pre


# ---------------------------- sizing helpers ------------------------------- #
def _vmem_budget_bytes():
    """Usable per-core VMEM budget (~75% of capacity; 64 MiB v7x fallback)."""
    try:
        cap = pltpu.get_tpu_info().vmem_capacity_bytes
    except Exception:
        cap = 64 * 1024 * 1024
    return int(cap) * 3 // 4


def _resident_bytes(n_pad, lane, n_layers, tm):
    return (n_pad * n_pad * 2                  # A_hat bf16 (single VMEM copy)
            + 2 * n_pad * lane * 2             # ping-pong H bf16
            + 2 * n_layers * lane * lane * 2   # W stack bf16 (2 pipeline bufs)
            + 2 * n_layers * lane * 4          # b stack f32
            + tm * lane * 4)                   # output staging tile


def _streamed_bytes(n_pad, lane, n_layers, tm):
    return (2 * tm * n_pad * 2                 # double-buffered A row tile bf16
            + 2 * n_pad * lane * 2             # ping-pong H bf16
            + 2 * n_layers * lane * lane * 2
            + 2 * n_layers * lane * 4
            + 2 * tm * lane * 4)               # double-buffered out tile f32


# ------------------------------- wrapper ----------------------------------- #
def gnn_forward(a_hat, x, params, *, tm=256, lane=128, force_streamed=False):
    """Fused 4-layer GCN forward.  a_hat: (N, N) f32 normalized adjacency,
    x: (N, F) f32 node features, params: [(W, b), ...] with true (unpadded) shapes."""
    n, f_in = x.shape
    f_out = params[-1][0].shape[1]
    n_layers = len(params)
    assert f_in <= lane and all(w.shape[0] <= lane and w.shape[1] <= lane
                                for w, _ in params)

    budget = _vmem_budget_bytes()
    n_pad = pl.cdiv(n, tm) * tm
    resident = (not force_streamed) and (
        _resident_bytes(n_pad, lane, n_layers, tm) <= budget)
    if not resident:
        # Streamed path: shrink tm (>=128) until double-buffered A tiles + H fit.
        while tm > 128 and _streamed_bytes(pl.cdiv(n, tm) * tm, lane,
                                           n_layers, tm) > budget:
            tm //= 2
        n_pad = pl.cdiv(n, tm) * tm

    # Zero padding is exact (padded rows/cols of A_hat, W, b are zero).
    # A_hat / X / W are pre-cast to bf16 so every MXU push is bf16 x bf16 -> f32.
    x_p = jnp.pad(x, ((0, n_pad - n), (0, lane - f_in))).astype(jnp.bfloat16)
    a_p = jnp.pad(a_hat, ((0, n_pad - n), (0, n_pad - n))).astype(jnp.bfloat16)
    w_stack = jnp.stack(
        [jnp.pad(w, ((0, lane - w.shape[0]), (0, lane - w.shape[1])))
         for w, _ in params]).astype(jnp.bfloat16)                # (L, 128, 128) bf16
    b_stack = jnp.stack(
        [jnp.pad(b.reshape(1, -1), ((0, 0), (0, lane - b.shape[-1])))
         for _, b in params])                                     # (L, 1, 128) f32

    grid = (n_layers, n_pad // tm)        # layers outer (sequential), rows inner
    w_spec = pl.BlockSpec((n_layers, lane, lane), lambda l, r: (0, 0, 0))
    b_spec = pl.BlockSpec((n_layers, 1, lane), lambda l, r: (0, 0, 0))

    need = (_resident_bytes if resident else _streamed_bytes)(
        n_pad, lane, n_layers, tm)
    vmem_limit = int(min(max(need * 3 // 2 + (8 << 20), 32 << 20),
                         max(budget, need + (8 << 20))))
    cparams = pltpu.CompilerParams(
        # Row axis stays "arbitrary": inside one fused multi-layer kernel, layer
        # l+1 reads every row tile of layer l from this core's private H scratch.
        # TODO(synk): v7x dual-TensorCore split via core_map + shared H.
        dimension_semantics=("arbitrary", "arbitrary"),
        vmem_limit_bytes=vmem_limit,
    )

    if resident:
        out_p = pl.pallas_call(
            _gnn_resident_kernel,
            out_shape=jax.ShapeDtypeStruct((n_pad, lane), jnp.float32),
            grid_spec=pltpu.PrefetchScalarGridSpec(
                num_scalar_prefetch=0,
                grid=grid,
                in_specs=[
                    pl.BlockSpec(memory_space=pl.ANY),    # A_hat (one-time DMA)
                    pl.BlockSpec(memory_space=pl.ANY),    # X     (one-time DMA)
                    w_spec,
                    b_spec,
                ],
                out_specs=pl.BlockSpec(memory_space=pl.ANY),   # manual DMA out
                scratch_shapes=[
                    pltpu.VMEM((n_pad, n_pad), jnp.bfloat16),   # resident A_hat
                    pltpu.VMEM((2, n_pad, lane), jnp.bfloat16),  # ping-pong H
                    pltpu.VMEM((tm, lane), jnp.float32),         # out staging
                    pltpu.SemaphoreType.DMA((3,)),
                ],
            ),
            compiler_params=cparams,
        )(a_p, x_p, w_stack, b_stack)
    else:
        out_p = pl.pallas_call(
            _gnn_streamed_kernel,
            out_shape=jax.ShapeDtypeStruct((n_pad, lane), jnp.float32),
            grid_spec=pltpu.PrefetchScalarGridSpec(
                num_scalar_prefetch=0,
                grid=grid,
                in_specs=[
                    pl.BlockSpec((tm, n_pad), lambda l, r: (r, 0)),  # A row tile
                    pl.BlockSpec(memory_space=pl.ANY),               # X
                    w_spec,
                    b_spec,
                ],
                out_specs=pl.BlockSpec((tm, lane), lambda l, r: (r, 0)),
                scratch_shapes=[
                    pltpu.VMEM((2, n_pad, lane), jnp.bfloat16),      # ping-pong H
                    pltpu.SemaphoreType.DMA((1,)),
                ],
            ),
            compiler_params=cparams,
        )(a_p, x_p, w_stack, b_stack)

    return out_p[:n, :f_out]


# ------------------------------- JAX glue ---------------------------------- #
def build_norm_adj(edge_index, num_nodes):
    """Dense D^{-1/2}(A+I)D^{-1/2} from edge_index (2, E) int32.
    Duplicate edges scatter-add; self-loops added only where missing (PyG)."""
    src, dst = edge_index[0], edge_index[1]
    a = jnp.zeros((num_nodes, num_nodes), jnp.float32)
    a = a.at[dst, src].add(1.0)                              # messages flow src -> dst
    diag = jnp.diag(a)
    a = a + jnp.diag(jnp.where(diag == 0.0, 1.0, 0.0))       # add only missing self-loops
    deg = jnp.sum(a, axis=1)
    dinv = jnp.where(deg > 0, jax.lax.rsqrt(deg), 0.0)
    return dinv[:, None] * a * dinv[None, :]


def glorot(key, fan_in, fan_out):
    limit = jnp.sqrt(6.0 / (fan_in + fan_out))
    return jax.random.uniform(key, (fan_in, fan_out), jnp.float32,
                              minval=-limit, maxval=limit)


def init_params(key, num_features):
    dims = [num_features, 32, 16, 8, num_features]
    params = []
    for i in range(4):
        key, wk, bk = jax.random.split(key, 3)
        w = glorot(wk, dims[i], dims[i + 1])
        # small random bias (PyG default is zeros) so the check exercises the bias path
        b = 0.1 * jax.random.normal(bk, (dims[i + 1],), jnp.float32)
        params.append((w, b))
    return params


def gnn_reference(a_hat, x, params):
    """Pure-JAX f32 reference (HIGHEST precision) of the same forward pass."""
    h = x
    hi = jax.lax.Precision.HIGHEST
    for i, (w, b) in enumerate(params):
        h = jnp.dot(a_hat, jnp.dot(h, w, precision=hi), precision=hi) + b.reshape(1, -1)
        if i < len(params) - 1:
            h = jnp.maximum(h, 0.0)
    return h


# --------------------------------- main ------------------------------------ #
if __name__ == "__main__":
    # Batch of 16 independent 16-node ring graphs (disjoint union == GCN batch)
    # -> 256 nodes: one full 256-row MXU tile of real work, grid (4, 1).
    G, NG, F = 16, 16, 8
    N = G * NG

    key = jax.random.PRNGKey(0)
    key, xk = jax.random.split(key)
    x = jax.random.normal(xk, (N, F), jnp.float32)

    node = jnp.arange(NG, dtype=jnp.int32)
    ring_next = (node + 1) % NG
    offs = jnp.arange(G, dtype=jnp.int32)[:, None] * NG
    src = jnp.concatenate([(node + offs).reshape(-1), (ring_next + offs).reshape(-1)])
    dst = jnp.concatenate([(ring_next + offs).reshape(-1), (node + offs).reshape(-1)])
    edge_index = jnp.stack([src, dst], axis=0)               # (2, 2*G*NG)

    a_hat = build_norm_adj(edge_index, N)
    params = init_params(key, F)
    ref = gnn_reference(a_hat, x, params)

    # Primary (A_hat-resident) path.
    out = jax.block_until_ready(gnn_forward(a_hat, x, params))
    assert out.shape == (N, F) and out.dtype == jnp.float32
    # Loose tolerance: kernel uses bf16 A_hat / H / W on the MXU (f32 accumulate);
    # reference is full f32.  Structural bugs give rel ~ O(1).
    rel = jnp.linalg.norm(out - ref) / (jnp.linalg.norm(ref) + 1e-12)
    assert float(rel) < 0.08, f"resident path relative error too large: {float(rel)}"

    # Streamed fallback path (large-graph mode), validated here at tiny size.
    out_s = jax.block_until_ready(
        gnn_forward(a_hat, x, params, force_streamed=True))
    rel_s = jnp.linalg.norm(out_s - ref) / (jnp.linalg.norm(ref) + 1e-12)
    assert float(rel_s) < 0.08, f"streamed path relative error too large: {float(rel_s)}"

    print("KERNEL_OK")
</pallas_src>

<mosaic_0001>
module attributes {stable_mosaic.version = 11 : i64} {
  func.func @_gnn_resident_kernel(%arg0: i32, %arg1: i32, %arg2: memref<256x256xbf16, #tpu.memory_space<any>>, %arg3: memref<256x128xbf16, #tpu.memory_space<any>>, %arg4: memref<4x128x128xbf16, #tpu.memory_space<vmem>>, %arg5: memref<4x1x128xf32, #tpu.memory_space<vmem>>, %arg6: memref<256x128xf32, #tpu.memory_space<any>>, %arg7: memref<256x256xbf16, #tpu.memory_space<vmem>>, %arg8: memref<2x256x128xbf16, #tpu.memory_space<vmem>>, %arg9: memref<256x128xf32, #tpu.memory_space<vmem>>, %arg10: memref<3x!tpu.dma_semaphore, #tpu.memory_space<semaphore_mem>>) attributes {dimension_semantics = [#tpu.dimension_semantics<arbitrary>, #tpu.dimension_semantics<arbitrary>], iteration_bounds = array<i64: 4, 1>, scalar_prefetch = 0 : i64, scratch_operands = 4 : i64, tpu.core_type = #tpu.core_type<tc>, window_params = [{}, {}, {pipeline_mode = #tpu.pipeline_mode<synchronous>, transform_indices = @transform_2, window_bounds = array<i64: 4, 128, 128>}, {pipeline_mode = #tpu.pipeline_mode<synchronous>, transform_indices = @transform_3, window_bounds = array<i64: 4, 1, 128>}, {}]} {
    %c0_i32 = arith.constant 0 : i32
    %0 = arith.cmpi eq, %arg0, %c0_i32 : i32
    %c0_i32_0 = arith.constant 0 : i32
    %1 = arith.cmpi eq, %arg1, %c0_i32_0 : i32
    %2 = arith.andi %0, %1 : i1
    %3 = arith.extui %2 : i1 to i32
    %c0_i32_1 = arith.constant 0 : i32
    %4 = arith.cmpi ne, %3, %c0_i32_1 : i32
    scf.if %4 {
      %c0_i32_14 = arith.constant 0 : i32
      %37 = tpu.memref_slice %arg10[%c0_i32_14] : memref<3x!tpu.dma_semaphore, #tpu.memory_space<semaphore_mem>> -> memref<1x!tpu.dma_semaphore, #tpu.memory_space<semaphore_mem>>
      %38 = tpu.memref_squeeze %37 : memref<1x!tpu.dma_semaphore, #tpu.memory_space<semaphore_mem>> -> memref<!tpu.dma_semaphore, #tpu.memory_space<semaphore_mem>>
      tpu.enqueue_dma source(%arg2 : memref<256x256xbf16, #tpu.memory_space<any>>) target(%arg7 : memref<256x256xbf16, #tpu.memory_space<vmem>>) target_semaphore(%38 : memref<!tpu.dma_semaphore, #tpu.memory_space<semaphore_mem>>)
      %c0_i32_15 = arith.constant 0 : i32
      %c1_i32_16 = arith.constant 1 : i32
      %c0_i32_17 = arith.constant 0 : i32
      %c0_i32_18 = arith.constant 0 : i32
      %39 = tpu.memref_slice %arg8[%c0_i32_15, %c0_i32_17, %c0_i32_18] : memref<2x256x128xbf16, #tpu.memory_space<vmem>> -> memref<1x256x128xbf16, #tpu.memory_space<vmem>>
      %40 = tpu.memref_squeeze %39 : memref<1x256x128xbf16, #tpu.memory_space<vmem>> -> memref<256x128xbf16, #tpu.memory_space<vmem>>
      %41 = tpu.memref_slice %arg10[%c1_i32_16] : memref<3x!tpu.dma_semaphore, #tpu.memory_space<semaphore_mem>> -> memref<1x!tpu.dma_semaphore, #tpu.memory_space<semaphore_mem>>
      %42 = tpu.memref_squeeze %41 : memref<1x!tpu.dma_semaphore, #tpu.memory_space<semaphore_mem>> -> memref<!tpu.dma_semaphore, #tpu.memory_space<semaphore_mem>>
      tpu.enqueue_dma source(%arg3 : memref<256x128xbf16, #tpu.memory_space<any>>) target(%40 : memref<256x128xbf16, #tpu.memory_space<vmem>>) target_semaphore(%42 : memref<!tpu.dma_semaphore, #tpu.memory_space<semaphore_mem>>)
      %c0_i32_19 = arith.constant 0 : i32
      %43 = tpu.memref_slice %arg10[%c0_i32_19] : memref<3x!tpu.dma_semaphore, #tpu.memory_space<semaphore_mem>> -> memref<1x!tpu.dma_semaphore, #tpu.memory_space<semaphore_mem>>
      %44 = tpu.memref_squeeze %43 : memref<1x!tpu.dma_semaphore, #tpu.memory_space<semaphore_mem>> -> memref<!tpu.dma_semaphore, #tpu.memory_space<semaphore_mem>>
      tpu.wait_dma2 semaphore(%44 : memref<!tpu.dma_semaphore, #tpu.memory_space<semaphore_mem>>) src(%arg2 : memref<256x256xbf16, #tpu.memory_space<any>>) dst(%arg7 : memref<256x256xbf16, #tpu.memory_space<vmem>>)
      %c0_i32_20 = arith.constant 0 : i32
      %c1_i32_21 = arith.constant 1 : i32
      %c0_i32_22 = arith.constant 0 : i32
      %c0_i32_23 = arith.constant 0 : i32
      %45 = tpu.memref_slice %arg8[%c0_i32_20, %c0_i32_22, %c0_i32_23] : memref<2x256x128xbf16, #tpu.memory_space<vmem>> -> memref<1x256x128xbf16, #tpu.memory_space<vmem>>
      %46 = tpu.memref_squeeze %45 : memref<1x256x128xbf16, #tpu.memory_space<vmem>> -> memref<256x128xbf16, #tpu.memory_space<vmem>>
      %47 = tpu.memref_slice %arg10[%c1_i32_21] : memref<3x!tpu.dma_semaphore, #tpu.memory_space<semaphore_mem>> -> memref<1x!tpu.dma_semaphore, #tpu.memory_space<semaphore_mem>>
      %48 = tpu.memref_squeeze %47 : memref<1x!tpu.dma_semaphore, #tpu.memory_space<semaphore_mem>> -> memref<!tpu.dma_semaphore, #tpu.memory_space<semaphore_mem>>
      tpu.wait_dma2 semaphore(%48 : memref<!tpu.dma_semaphore, #tpu.memory_space<semaphore_mem>>) src(%arg3 : memref<256x128xbf16, #tpu.memory_space<any>>) dst(%46 : memref<256x128xbf16, #tpu.memory_space<vmem>>)
    } else {
    }
    %c1_i32 = arith.constant 1 : i32
    %5 = arith.andi %arg0, %c1_i32 : i32
    %c1_i32_2 = arith.constant 1 : i32
    %6 = arith.addi %arg0, %c1_i32_2 : i32
    %c1_i32_3 = arith.constant 1 : i32
    %7 = arith.andi %6, %c1_i32_3 : i32
    %c256_i32 = arith.constant 256 : i32
    %8 = arith.muli %arg1, %c256_i32 : i32
    %9 = tpu.assume_multiple %8, 256 : i32
    %10 = arith.index_cast %9 : i32 to index
    %c0 = arith.constant 0 : index
    %11 = vector.load %arg7[%10, %c0] : memref<256x256xbf16, #tpu.memory_space<vmem>>, vector<256x256xbf16>
    %12 = arith.index_cast %5 : i32 to index
    %c0_4 = arith.constant 0 : index
    %c0_5 = arith.constant 0 : index
    %13 = vector.load %arg8[%12, %c0_4, %c0_5] : memref<2x256x128xbf16, #tpu.memory_space<vmem>>, vector<1x256x128xbf16>
    %14 = vector.shape_cast %13 : vector<1x256x128xbf16> to vector<256x128xbf16>
    %cst = arith.constant dense<0.000000e+00> : vector<256x128xf32>
    %15 = tpu.matmul %11, %14, %cst {dimension_numbers = #tpu.dot_dimension_numbers<[1], [0], [0], [1], [0, 0, 1, 1], [], []>} : vector<256x256xbf16>, vector<256x128xbf16>, vector<256x128xf32> -> vector<256x128xf32>
    %16 = arith.truncf %15 : vector<256x128xf32> to vector<256x128xbf16>
    %17 = arith.index_cast %arg0 : i32 to index
    %c0_6 = arith.constant 0 : index
    %c0_7 = arith.constant 0 : index
    %18 = vector.load %arg4[%17, %c0_6, %c0_7] : memref<4x128x128xbf16, #tpu.memory_space<vmem>>, vector<1x128x128xbf16>
    %19 = vector.shape_cast %18 : vector<1x128x128xbf16> to vector<128x128xbf16>
    %cst_8 = arith.constant dense<0.000000e+00> : vector<256x128xf32>
    %20 = tpu.matmul %16, %19, %cst_8 {dimension_numbers = #tpu.dot_dimension_numbers<[1], [0], [0], [1], [0, 0, 1, 1], [], []>} : vector<256x128xbf16>, vector<128x128xbf16>, vector<256x128xf32> -> vector<256x128xf32>
    %21 = arith.index_cast %arg0 : i32 to index
    %c0_9 = arith.constant 0 : index
    %c0_10 = arith.constant 0 : index
    %22 = vector.load %arg5[%21, %c0_9, %c0_10] : memref<4x1x128xf32, #tpu.memory_space<vmem>>, vector<1x1x128xf32>
    %23 = vector.shape_cast %22 : vector<1x1x128xf32> to vector<1x128xf32>
    %24 = vector.broadcast %23 : vector<1x128xf32> to vector<256x128xf32>
    %25 = arith.addf %20, %24 : vector<256x128xf32>
    %cst_11 = arith.constant 0.000000e+00 : f32
    %26 = vector.broadcast %cst_11 : f32 to vector<256x128xf32>
    %27 = arith.maximumf %25, %26 : vector<256x128xf32>
    %28 = arith.truncf %27 : vector<256x128xf32> to vector<256x128xbf16>
    %29 = arith.index_cast %7 : i32 to index
    %30 = arith.index_cast %9 : i32 to index
    %c0_12 = arith.constant 0 : index
    %31 = vector.load %arg8[%29, %30, %c0_12] : memref<2x256x128xbf16, #tpu.memory_space<vmem>>, vector<1x256x128xbf16>
    %32 = vector.shape_cast %31 : vector<1x256x128xbf16> to vector<256x128xbf16>
    %33 = vector.shape_cast %28 : vector<256x128xbf16> to vector<1x256x128xbf16>
    tpu.vector_store %arg8[%29, %30, %c0_12], %33 {strides = array<i32>} : memref<2x256x128xbf16, #tpu.memory_space<vmem>>, vector<1x256x128xbf16>,
    %c3_i32 = arith.constant 3 : i32
    %34 = arith.cmpi eq, %arg0, %c3_i32 : i32
    %35 = arith.extui %34 : i1 to i32
    %c0_i32_13 = arith.constant 0 : i32
    %36 = arith.cmpi ne, %35, %c0_i32_13 : i32
    scf.if %36 {
      %c0_14 = arith.constant 0 : index
      %c0_15 = arith.constant 0 : index
      %37 = vector.load %arg9[%c0_14, %c0_15] : memref<256x128xf32, #tpu.memory_space<vmem>>, vector<256x128xf32>
      tpu.vector_store %arg9[%c0_14, %c0_15], %25 {strides = array<i32>} : memref<256x128xf32, #tpu.memory_space<vmem>>, vector<256x128xf32>,
      %c2_i32 = arith.constant 2 : i32
      %c0_i32_16 = arith.constant 0 : i32
      %38 = tpu.memref_slice %arg6[%9, %c0_i32_16] : memref<256x128xf32, #tpu.memory_space<any>> -> memref<256x128xf32, #tpu.memory_space<any>>
      %39 = tpu.memref_slice %arg10[%c2_i32] : memref<3x!tpu.dma_semaphore, #tpu.memory_space<semaphore_mem>> -> memref<1x!tpu.dma_semaphore, #tpu.memory_space<semaphore_mem>>
      %40 = tpu.memref_squeeze %39 : memref<1x!tpu.dma_semaphore, #tpu.memory_space<semaphore_mem>> -> memref<!tpu.dma_semaphore, #tpu.memory_space<semaphore_mem>>
      tpu.enqueue_dma source(%arg9 : memref<256x128xf32, #tpu.memory_space<vmem>>) target(%38 : memref<256x128xf32, #tpu.memory_space<any>>) target_semaphore(%40 : memref<!tpu.dma_semaphore, #tpu.memory_space<semaphore_mem>>)
      %c2_i32_17 = arith.constant 2 : i32
      %c0_i32_18 = arith.constant 0 : i32
      %41 = tpu.memref_slice %arg6[%9, %c0_i32_18] : memref<256x128xf32, #tpu.memory_space<any>> -> memref<256x128xf32, #tpu.memory_space<any>>
      %42 = tpu.memref_slice %arg10[%c2_i32_17] : memref<3x!tpu.dma_semaphore, #tpu.memory_space<semaphore_mem>> -> memref<1x!tpu.dma_semaphore, #tpu.memory_space<semaphore_mem>>
      %43 = tpu.memref_squeeze %42 : memref<1x!tpu.dma_semaphore, #tpu.memory_space<semaphore_mem>> -> memref<!tpu.dma_semaphore, #tpu.memory_space<semaphore_mem>>
      tpu.wait_dma2 semaphore(%43 : memref<!tpu.dma_semaphore, #tpu.memory_space<semaphore_mem>>) src(%arg9 : memref<256x128xf32, #tpu.memory_space<vmem>>) dst(%41 : memref<256x128xf32, #tpu.memory_space<any>>)
    } else {
    }
    return
  }
  func.func @transform_2(%arg0: i32, %arg1: i32) -> (i32, i32, i32) {
    %c0_i32 = arith.constant 0 : i32
    %c0_i32_0 = arith.constant 0 : i32
    %c0_i32_1 = arith.constant 0 : i32
    %c0_i32_2 = arith.constant 0 : i32
    return %c0_i32, %c0_i32_0, %c0_i32_1 : i32, i32, i32
  }
  func.func @transform_3(%arg0: i32, %arg1: i32) -> (i32, i32, i32) {
    %c0_i32 = arith.constant 0 : i32
    %c0_i32_0 = arith.constant 0 : i32
    %c0_i32_1 = arith.constant 0 : i32
    %c0_i32_2 = arith.constant 0 : i32
    return %c0_i32, %c0_i32_0, %c0_i32_1 : i32, i32, i32
  }
}

</mosaic_0001>

<bundles_post_ra>
// kernel: tpu_custom_call.1
= control target key start
LH: loop header
LB: loop body
LE: loop exit
PB: predicated region body
PF: predicated region fallthrough
CT: control target
= control target key end

     0   :  { %9 = vsyncpa [#allocation7], 0  ;;  %s2021_s0 = inlined_call_operand.hbm [shape: bf16[256,256], index: 0, kind: input, shape index: {}]   ;;  %s2022_s1 = inlined_call_operand.hbm [shape: bf16[256,128], index: 1, kind: input, shape index: {}]   ;;  %s2023_s2 = inlined_call_operand.hbm [shape: bf16[4,128,128], index: 2, kind: input, shape index: {}]   ;;  %s2024_s3 = inlined_call_operand.hbm [shape: f32[4,1,128], index: 3, kind: input, shape index: {}]   ;;  %s2025_s4 = inlined_call_operand.hbm [shape: f32[256,128], index: 4, kind: output, shape index: {}]  }
   0x1   :  { %10 = vsyncpa [#allocation9], 0  ;;  %s1760_s15 = smov 0   ;;  %s1762_s16 = smov 0  }
   0x2   :  { %s1764_s17 = smov 0  }
   0x3 LB: > { %s1063_s18 = sadd.s32 4294967295, %s1724_s17   ;;  %s25_s19 = sadd.s32 1, %s1720_s16  ;;  %s1724_s17 = sphi %s1764_s17, %s16_s17   ;;  %s1720_s16 = sphi %s1762_s16, %s2028_s16   ;;  %s1716_s15 = sphi %s1760_s15, %s2027_s15  }
   0x4   : > { %p27_p0 = scmp.ge.s32.totalorder %s25_s19, 4  ;;  %p1065_p1 = scmp.lt.s32.totalorder %s1724_s17, 1 }
   0x5   : > { %p1505_p2 = scmp.ge.s32.totalorder %s1724_s17, 1  ;;  %p1781_p3 = scmp.eq.s32.totalorder %s1063_s18, 0 }
   0x6   : > { %s2030_s19 = smov (%p27_p0, %s25_s19), 0  ;;  %s67_s23 = sshll.u32 %s2023_s2, 4  ;;  %s68_s23 = int_to_ptr.hbm [resolvable:$true] %s67_s23 }
   0x7   : > { %s1726_s24 = smov [#allocation6]   ;;  %p1499_p4 = pnand %p1781_p3, %p1505_p2 }
   0x8   : > { %s69_s25 = sshll.u32 %s1726_s24, 4  ;;  %s1727_s26 = smov 64   ;;  %s70_s25 = int_to_ptr.vmem [resolvable:$true] %s69_s25 }
   0x9   : > { %s1728_s27 = smov 4   ;;  %s81_s30 = sshll.u32 %s2024_s3, 4  ;;  %s82_s30 = int_to_ptr.hbm [resolvable:$true] %s81_s30 }
   0xa   : > { %1501 = dma.hbm_to_vmem [thread:$0]  (!%p1499_p4), %s68_s23, 4096, %s70_s25, [#allocation7], %s1727_s26, %s1727_s26, %s1728_s27  }
   0xb   : > { %s1729_s5 = smov [#allocation8]   ;;  %s1730_s7 = smov 16  }
   0xc   : > { %s83_s6 = sshll.u32 %s1729_s5, 4  ;;  %s1731_s8 = smov 1   ;;  %s84_s6 = int_to_ptr.vmem [resolvable:$true] %s83_s6 }
   0xd   : > { %1504 = dma.hbm_to_vmem [thread:$0]  (!%p1499_p4), %s82_s30, 64, %s84_s6, [#allocation9], %s1730_s7, %s1730_s7, %s1731_s8  }
   0xe   : > { %97 = sbr.rel (%p1065_p1) target bundleno = 563 (0x233), region = 28 }
  0x13   : > { %1697 = dma.done.wait (%p1781_p3), [#allocation7], 4096  }
  0x14   : > { %1699 = vsyncadd (%p1781_p3), [#allocation7], 4294963200 }
  0x15   : > { %1701 = dma.done.wait (%p1781_p3), [#allocation9], 64  }
  0x16   : > { %1703 = vsyncadd (%p1781_p3), [#allocation9], 4294967232  ;;  %p113_p5 = scmp.eq.s32.totalorder %s1716_s15, 0  ;;  %s126_s11 = sshll.u32 %s2021_s0, 4  ;;  %s127_s11 = int_to_ptr.hbm [resolvable:$true] %s126_s11 }
  0x17   : > { %s1732_s12 = smov [#allocation2]   ;;  %s140_s21 = sshll.u32 %s2022_s1, 4  ;;  %s141_s21 = int_to_ptr.hbm [resolvable:$true] %s140_s21 }
  0x18   : > { %s128_s13 = sshll.u32 %s1732_s12, 4  ;;  %s1733_s20 = smov [#allocation3]   ;;  %s129_s13 = int_to_ptr.vmem [resolvable:$true] %s128_s13 }
  0x19   : > { %1494 = dma.hbm_to_vmem [thread:$0]  (%p113_p5), %s127_s11, 4096, %s129_s13, [#allocation5] }
  0x1a   : > { %s142_s22 = sshll.u32 %s1733_s20, 4  ;;  %s143_s22 = int_to_ptr.vmem [resolvable:$true] %s142_s22 }
  0x1b   : > { %1495 = dma.hbm_to_vmem [thread:$0]  (%p113_p5), %s141_s21, 2048, %s143_s22, [#allocation5 + $0x1] }
  0x1c   : > { %1705 = dma.done.wait (%p113_p5), [#allocation5], 4096 }
  0x1d   : > { %1707 = vsyncadd (%p113_p5), [#allocation5], 4294963200 }
  0x1e   : > { %1709 = dma.done.wait (%p113_p5), [#allocation5 + $0x1], 2048 }
  0x1f   : > { %1711 = vsyncadd (%p113_p5), [#allocation5 + $0x1], 4294965248  ;;  %s153_s23 = sand.u32 1, %s1716_s15  ;;  %v1077_v15 = vld [vmem:[#allocation2] sm:$0xf]  ;;  %s1357_s26 = sshll.u32 %s1716_s15, 6 }
  0x20   : > { %s1340_s24 = sshll.u32 %s153_s23, 7  ;;  %v1309_v16 = vld [vmem:[#allocation2 + $0x4] sm:$0xf0]  ;;  %v1173_v17 = vld [vmem:[#allocation2 + $0xc0] sm:$0xf]  ;;  %s1842_s27 = scalar_lea.vmem [#allocation6], %s1357_s26 }
  0x21   : > { %s1823_s25 = scalar_lea.vmem [#allocation3], %s1340_s24  ;;  %v1333_v18 = vld [vmem:[#allocation2 + $0xc4] sm:$0xf0]  ;;  %v1308_v20 = vld [vmem:[#allocation2 + $0x4] sm:$0xf]  ;;  %v1078_v22 = vor.u32 %v1309_v16, %v1077_v15  ;;  %v1365_v61 = vld [vmem:[%s1842_s27 + $0x38] sm:$0xff] }
  0x22   : > { %v1348_v0 = vld [vmem:[%s1823_s25 + $0x38] sm:$0xff]  ;;  %v1347_v2 = vld [vmem:[%s1823_s25 + $0x30] sm:$0xff]  ;;  %v1346_v4 = vld [vmem:[%s1823_s25 + $0x28] sm:$0xff]  ;;  %v1174_v23 = vor.u32 %v1333_v18, %v1173_v17  ;;  %751 = vmatpush.bf16.msra.mxu2 %v1365_v61  ;;  %s698_s28 = scalar_lea.vmem [#allocation8], %s1716_s15  ;;  %s154_s29 = sadd.s32 1, %s1716_s15 }
  0x23   : > { %v1356_v1 = vld [vmem:[%s1823_s25 + $0x78] sm:$0xff]  ;;  %485 = vmatpush.bf16.msra.mxu0 %v1348_v0  ;;  %1462 = vmatpush.bf16.msra.mxu3 %v1348_v0  ;;  %v1355_v3 = vld [vmem:[%s1823_s25 + $0x70] sm:$0xff]  ;;  %v1354_v5 = vld [vmem:[%s1823_s25 + $0x68] sm:$0xff]  ;;  %s155_s30 = sand.u32 1, %s154_s29  ;;  %p1303_p6 = scmp.ne.s32.totalorder %s1716_s15, 3 }
  0x24   : > { %574 = vmatpush.bf16.msra.mxu1 %v1356_v1  ;;  %v1345_v6 = vld [vmem:[%s1823_s25 + $0x20] sm:$0xff]  ;;  %v1344_v8 = vld [vmem:[%s1823_s25 + $0x18] sm:$0xff]  ;;  %v1343_v10 = vld [vmem:[%s1823_s25 + $0x10] sm:$0xff]  ;;  %s1366_s5 = sshll.u32 %s155_s30, 7  ;;  %s1734_s15 = smov (!%p1303_p6), [#allocation4]  }
  0x25   : > { %v1353_v7 = vld [vmem:[%s1823_s25 + $0x60] sm:$0xff]  ;;  %v1352_v9 = vld [vmem:[%s1823_s25 + $0x58] sm:$0xff]  ;;  %v1351_v11 = vld [vmem:[%s1823_s25 + $0x50] sm:$0xff]  ;;  %s1878_s6 = scalar_lea.vmem [#allocation3], %s1366_s5  ;;  %s985_s7 = sshll.u32 (!%p1303_p6), %s1734_s15, 4  ;;  %s986_s7 = int_to_ptr.vmem [resolvable:$true] %s985_s7 }
  0x26   : > { %v1342_v12 = vld [vmem:[%s1823_s25 + $0x8] sm:$0xff]  ;;  %v1341_v14 = vld [vmem:[%s1823_s25] sm:$0xff]  ;;  %v1085_v25 = vld [vmem:[#allocation2 + $0x10] sm:$0xf]  ;;  %s987_s10 = sshll.u32 (!%p1303_p6), %s2025_s4, 4  ;;  %s988_s10 = int_to_ptr.hbm [resolvable:$true] %s987_s10 }
  0x27   : > { %486 = vmatpush.bf16.msra.mxu0 %v1347_v2  ;;  %1463 = vmatpush.bf16.msra.mxu3 %v1347_v2  ;;  %v1350_v13 = vld [vmem:[%s1823_s25 + $0x48] sm:$0xff]  ;;  %v1349_v19 = vld [vmem:[%s1823_s25 + $0x40] sm:$0xff]  ;;  %v1311_v26 = vld [vmem:[#allocation2 + $0x14] sm:$0xf0] }
  0x28   : > { %575 = vmatpush.bf16.msra.mxu1 %v1355_v3  ;;  %v1079_v21 = vld [vmem:[#allocation2 + $0x8] sm:$0xf0]  ;;  %v1181_v27 = vld [vmem:[#allocation2 + $0xd0] sm:$0xf]  ;;  %v1335_v28 = vld [vmem:[#allocation2 + $0xd4] sm:$0xf0]  ;;  %v1086_v31 = vor.u32 %v1311_v26, %v1085_v25 }
  0x29   : > { %v1082_v24 = vor.u32 %v1308_v20, %v1079_v21  ;;  %v1310_v29 = vld [vmem:[#allocation2 + $0x14] sm:$0xf]  ;;  %v1087_v30 = vld [vmem:[#allocation2 + $0x18] sm:$0xf0]  ;;  %v1182_v32 = vor.u32 %v1335_v28, %v1181_v27  ;;  %v1093_v34 = vld [vmem:[#allocation2 + $0x20] sm:$0xf] }
  0x2a   : > { %v1090_v33 = vor.u32 %v1310_v29, %v1087_v30  ;;  %v1313_v35 = vld [vmem:[#allocation2 + $0x24] sm:$0xf0]  ;;  %v1189_v36 = vld [vmem:[#allocation2 + $0xe0] sm:$0xf]  ;;  %v1312_v38 = vld [vmem:[#allocation2 + $0x24] sm:$0xf] }
  0x2b   : > { %487 = vmatpush.bf16.msra.mxu0 %v1346_v4  ;;  %1464 = vmatpush.bf16.msra.mxu3 %v1346_v4  ;;  %v1337_v37 = vld [vmem:[#allocation2 + $0xe4] sm:$0xf0]  ;;  %v1095_v39 = vld [vmem:[#allocation2 + $0x28] sm:$0xf0]  ;;  %v1094_v40 = vor.u32 %v1313_v35, %v1093_v34  ;;  %v1101_v43 = vld [vmem:[#allocation2 + $0x30] sm:$0xf] }
  0x2c   : > { %576 = vmatpush.bf16.msra.mxu1 %v1354_v5  ;;  %v1190_v41 = vor.u32 %v1337_v37, %v1189_v36  ;;  %v1098_v42 = vor.u32 %v1312_v38, %v1095_v39  ;;  %v1315_v44 = vld [vmem:[#allocation2 + $0x34] sm:$0xf0]  ;;  %v1197_v45 = vld [vmem:[#allocation2 + $0xf0] sm:$0xf]  ;;  %v1314_v47 = vld [vmem:[#allocation2 + $0x34] sm:$0xf] }
  0x2d   : > { %v1339_v46 = vld [vmem:[#allocation2 + $0xf4] sm:$0xf0]  ;;  %v1103_v48 = vld [vmem:[#allocation2 + $0x38] sm:$0xf0]  ;;  %v1102_v49 = vor.u32 %v1315_v44, %v1101_v43  ;;  %v1109_v52 = vld [vmem:[#allocation2 + $0x40] sm:$0xf] }
  0x2e   : > { %v1198_v50 = vor.u32 %v1339_v46, %v1197_v45  ;;  %v1106_v51 = vor.u32 %v1314_v47, %v1103_v48  ;;  %v1317_v53 = vld [vmem:[#allocation2 + $0x44] sm:$0xf0]  ;;  %v1332_v54 = vld [vmem:[#allocation2 + $0xc4] sm:$0xf]  ;;  %v1175_v55 = vld [vmem:[#allocation2 + $0xc8] sm:$0xf0] }
  0x2f   : > { %488 = vmatpush.bf16.msra.mxu0 %v1345_v6  ;;  %1465 = vmatpush.bf16.msra.mxu3 %v1345_v6  ;;  %v1316_v56 = vld [vmem:[#allocation2 + $0x44] sm:$0xf]  ;;  %v1111_v57 = vld [vmem:[#allocation2 + $0x48] sm:$0xf0]  ;;  %v1110_v58 = vor.u32 %v1317_v53, %v1109_v52  ;;  %v1178_v59 = vor.u32 %v1332_v54, %v1175_v55  ;;  %v1364_v62 = vld [vmem:[%s1842_s27 + $0x30] sm:$0xff] }
  0x30   : > { %577 = vmatpush.bf16.msra.mxu1 %v1353_v7  ;;  %v1114_v60 = vor.u32 %v1316_v56, %v1111_v57  ;;  %752 = vmatpush.bf16.msra.mxu2 %v1364_v62  ;;  %v1117_v63 = vld [vmem:[#allocation2 + $0x50] sm:$0xf]  ;;  %v1319_v0 = vld [vmem:[#allocation2 + $0x54] sm:$0xf0]  ;;  %v1183_v2 = vld [vmem:[#allocation2 + $0xd8] sm:$0xf0] }
  0x31   : > { %v1119_v4 = vld [vmem:[#allocation2 + $0x58] sm:$0xf0]  ;;  %v1320_v15 = vld [vmem:[#allocation2 + $0x64] sm:$0xf]  ;;  %v1127_v16 = vld [vmem:[#allocation2 + $0x68] sm:$0xf0] }
  0x32   : > { %v1360_v20 = vld [vmem:[%s1842_s27 + $0x10] sm:$0xff]  ;;  %v1359_v21 = vld [vmem:[%s1842_s27 + $0x8] sm:$0xff]  ;;  %v1199_v26 = vld [vmem:[#allocation2 + $0xf8] sm:$0xf0] }
  0x33   : > { %489 = vmatpush.bf16.msra.mxu0 %v1344_v8  ;;  %1466 = vmatpush.bf16.msra.mxu3 %v1344_v8  ;;  %v1363_v8 = vld [vmem:[%s1842_s27 + $0x28] sm:$0xff]  ;;  %v1338_v25 = vld [vmem:[#allocation2 + $0xf4] sm:$0xf]  ;;  %v1135_v28 = vld [vmem:[#allocation2 + $0x78] sm:$0xf0] }
  0x34   : > { %578 = vmatpush.bf16.msra.mxu1 %v1352_v9  ;;  %753 = vmatpush.bf16.msra.mxu2 %v1363_v8  ;;  %v1322_v27 = vld [vmem:[#allocation2 + $0x74] sm:$0xf]  ;;  %v1202_v30 = vor.u32 %v1338_v25, %v1199_v26  ;;  %v1324_v34 = vld [vmem:[#allocation2 + $0x84] sm:$0xf]  ;;  %v1143_v35 = vld [vmem:[#allocation2 + $0x88] sm:$0xf0] }
  0x35   : > { %v1146_v38 = vor.u32 %v1324_v34, %v1143_v35  ;;  %v1149_v46 = vld [vmem:[#allocation2 + $0x90] sm:$0xf]  ;;  %v1327_v47 = vld [vmem:[#allocation2 + $0x94] sm:$0xf0]  ;;  %v1326_v48 = vld [vmem:[#allocation2 + $0x94] sm:$0xf] }
  0x37   : > { %490 = vmatpush.bf16.msra.mxu0 %v1343_v10  ;;  %1467 = vmatpush.bf16.msra.mxu3 %v1343_v10  ;;  %v1361_v10 = vld [vmem:[%s1842_s27 + $0x18] sm:$0xff] }
  0x38   : > { %579 = vmatpush.bf16.msra.mxu1 %v1351_v11 }
  0x3b   : > { %491 = vmatpush.bf16.msra.mxu0 %v1342_v12  ;;  %1468 = vmatpush.bf16.msra.mxu3 %v1342_v12  ;;  %v1321_v12 = vld [vmem:[#allocation2 + $0x64] sm:$0xf0] }
  0x3c   : > { %580 = vmatpush.bf16.msra.mxu1 %v1350_v13 }
  0x3f   : > { %492 = vmatpush.bf16.msra.mxu0 %v1341_v14  ;;  %1469 = vmatpush.bf16.msra.mxu3 %v1341_v14  ;;  %v1191_v14 = vld [vmem:[#allocation2 + $0xe8] sm:$0xf0] }
  0x40   : > { %581 = vmatpush.bf16.msra.mxu1 %v1349_v19 }
  0x42   : > { %493 = vmatmul.bf16.vlgmr.msra.gmra.mxu0 %v1078_v22  ;;  %553 = vmatmul.bf16.vlgmr.msra.gmra.mxu3 %v1174_v23  ;;  %v1358_v22 = vld [vmem:[%s1842_s27] sm:$0xff]  ;;  %v1133_v23 = vld [vmem:[#allocation2 + $0x70] sm:$0xf] }
  0x43   : > { %1470 = vmatpush.bf16.msrb.mxu3 %v1356_v1  ;;  %582 = vmatmul.bf16.vlgmr.msra.gmra.mxu1 %v1082_v24  ;;  %v1334_v1 = vld [vmem:[#allocation2 + $0xd4] sm:$0xf]  ;;  %v1323_v24 = vld [vmem:[#allocation2 + $0x74] sm:$0xf0] }
  0x44   : > { %v1186_v6 = vor.u32 %v1334_v1, %v1183_v2  ;;  %v1134_v29 = vor.u32 %v1323_v24, %v1133_v23 }
  0x47   : > { %1471 = vmatpush.bf16.msrb.mxu3 %v1355_v3  ;;  %v1318_v3 = vld [vmem:[#allocation2 + $0x54] sm:$0xf] }
  0x4b   : > { %1472 = vmatpush.bf16.msrb.mxu3 %v1354_v5  ;;  %v1118_v5 = vor.u32 %v1319_v0, %v1117_v63  ;;  %v1328_v63 = vld [vmem:[#allocation2 + $0xa4] sm:$0xf]  ;;  %v1159_v0 = vld [vmem:[#allocation2 + $0xa8] sm:$0xf0] }
  0x4f   : > { %1473 = vmatpush.bf16.msrb.mxu3 %v1353_v7  ;;  %v1122_v7 = vor.u32 %v1318_v3, %v1119_v4  ;;  %v1162_v4 = vor.u32 %v1328_v63, %v1159_v0 }
  0x52   : > { %498 = vmatmul.bf16.gmra.mxu0 %v1086_v31  ;;  %558 = vmatmul.bf16.gmra.mxu3 %v1182_v32  ;;  %v1138_v31 = vor.u32 %v1322_v27, %v1135_v28  ;;  %v1141_v32 = vld [vmem:[#allocation2 + $0x80] sm:$0xf] }
  0x53   : > { %1474 = vmatpush.bf16.msrb.mxu3 %v1352_v9  ;;  %587 = vmatmul.bf16.gmra.mxu1 %v1090_v33  ;;  %v1362_v9 = vld [vmem:[%s1842_s27 + $0x20] sm:$0xff]  ;;  %v1325_v33 = vld [vmem:[#allocation2 + $0x84] sm:$0xf0] }
  0x54   : > { %754 = vmatpush.bf16.msra.mxu2 %v1362_v9  ;;  %v1142_v36 = vor.u32 %v1325_v33, %v1141_v32 }
  0x57   : > { %1475 = vmatpush.bf16.msrb.mxu3 %v1351_v11  ;;  %v1125_v11 = vld [vmem:[#allocation2 + $0x60] sm:$0xf] }
  0x58   : > { %755 = vmatpush.bf16.msra.mxu2 %v1361_v10  ;;  %v1126_v17 = vor.u32 %v1321_v12, %v1125_v11  ;;  %v1165_v12 = vld [vmem:[#allocation2 + $0xb0] sm:$0xf] }
  0x5b   : > { %1476 = vmatpush.bf16.msrb.mxu3 %v1350_v13  ;;  %v1336_v13 = vld [vmem:[#allocation2 + $0xe4] sm:$0xf] }
  0x5c   : > { %v1194_v18 = vor.u32 %v1336_v13, %v1191_v14  ;;  %756 = vmatpush.bf16.msra.mxu2 %v1360_v20  ;;  %v1331_v13 = vld [vmem:[#allocation2 + $0xb4] sm:$0xf0]  ;;  %v1330_v14 = vld [vmem:[#allocation2 + $0xb4] sm:$0xf] }
  0x5f   : > { %1477 = vmatpush.bf16.msrb.mxu3 %v1349_v19  ;;  %v1130_v19 = vor.u32 %v1320_v15, %v1127_v16  ;;  %v1167_v15 = vld [vmem:[#allocation2 + $0xb8] sm:$0xf0] }
  0x60   : > { %757 = vmatpush.bf16.msra.mxu2 %v1359_v21 }
  0x62   : > { %503 = vmatmul.bf16.gmra.mxu0 %v1094_v40  ;;  %563 = vmatmul.bf16.gmra.mxu3 %v1190_v41 }
  0x63   : > { %592 = vmatmul.bf16.gmra.mxu1 %v1098_v42  ;;  %1478 = vmatpush.bf16.msra.mxu3 %v1365_v61  ;;  %v1157_v61 = vld [vmem:[#allocation2 + $0xa0] sm:$0xf] }
  0x64   : > { %758 = vmatpush.bf16.msra.mxu2 %v1358_v22 }
  0x67   : > { %1479 = vmatpush.bf16.msra.mxu3 %v1364_v62  ;;  %v1329_v62 = vld [vmem:[#allocation2 + $0xa4] sm:$0xf0] }
  0x68   : > { %v1158_v2 = vor.u32 %v1329_v62, %v1157_v61 }
  0x6b   : > { %1480 = vmatpush.bf16.msra.mxu3 %v1363_v8 }
  0x6f   : > { %1481 = vmatpush.bf16.msra.mxu3 %v1362_v9 }
  0x72   : > { %508 = vmatmul.bf16.gmra.mxu0 %v1102_v49  ;;  %568 = vmatmul.bf16.gmra.mxu3 %v1198_v50  ;;  %v1151_v49 = vld [vmem:[#allocation2 + $0x98] sm:$0xf0] }
  0x73   : > { %597 = vmatmul.bf16.gmra.mxu1 %v1106_v51  ;;  %1482 = vmatpush.bf16.msra.mxu3 %v1361_v10  ;;  %v1150_v51 = vor.u32 %v1327_v47, %v1149_v46  ;;  %v1154_v53 = vor.u32 %v1326_v48, %v1151_v49 }
  0x77   : > { %1483 = vmatpush.bf16.msra.mxu3 %v1360_v20 }
  0x7b   : > { %1484 = vmatpush.bf16.msra.mxu3 %v1359_v21 }
  0x7f   : > { %1485 = vmatpush.bf16.msra.mxu3 %v1358_v22 }
  0x82   : > { %513 = vmatmul.bf16.gmra.mxu0 %v1110_v58  ;;  %642 = vmatmul.bf16.vlgmr.msrb.gmra.mxu3 %v1178_v59 }
  0x83   : > { %602 = vmatmul.bf16.gmra.mxu1 %v1114_v60 }
  0x92   : > { %518 = vmatmul.bf16.gmra.mxu0 %v1118_v5  ;;  %647 = vmatmul.bf16.gmra.mxu3 %v1186_v6 }
  0x93   : > { %607 = vmatmul.bf16.gmra.mxu1 %v1122_v7 }
  0xa2   : > { %523 = vmatmul.bf16.gmra.mxu0 %v1126_v17  ;;  %652 = vmatmul.bf16.gmra.mxu3 %v1194_v18  ;;  %v1166_v17 = vor.u32 %v1331_v13, %v1165_v12 }
  0xa3   : > { %612 = vmatmul.bf16.gmra.mxu1 %v1130_v19  ;;  %v1170_v19 = vor.u32 %v1330_v14, %v1167_v15 }
  0xb2   : > { %528 = vmatmul.bf16.gmra.mxu0 %v1134_v29  ;;  %657 = vmatmul.bf16.gmra.mxu3 %v1202_v30 }
  0xb3   : > { %617 = vmatmul.bf16.gmra.mxu1 %v1138_v31 }
  0xbf   : > { %v494_v37 = vpop.f32.mrf.mxu0 }
  0xc0   : > { %v583_v39 = vpop.f32.mrf.mxu1 }
  0xc1   : > { %v584_v43 = vadd.f32 %v583_v39, %v494_v37 }
  0xc2   : > { %533 = vmatmul.bf16.gmra.mxu0 %v1142_v36 }
  0xc3   : > { %622 = vmatmul.bf16.gmra.mxu1 %v1146_v38 }
  0xc5   : > { %v1852_v40 = vpop.f32.mrf.mxu3 }
  0xc7   : > { %v496_v41 = vpop.f32.mrf.mxu0 }
  0xc8   : > { %v585_v42 = vpop.f32.mrf.mxu1 }
  0xc9   : > { %v586_v44 = vadd.f32 %v585_v42, %v496_v41 }
  0xcb   : > { %v663_v45 = vpack.c.bf16 %v586_v44, %v584_v43 }
  0xcd   : > { %759 = vmatmul.bf16.vlgmr.msra.gmra.mxu2 %v663_v45  ;;  %v1854_v50 = vpop.f32.mrf.mxu3 }
  0xcf   : > { %v499_v52 = vpop.f32.mrf.mxu0 }
  0xd0   : > { %v588_v54 = vpop.f32.mrf.mxu1 }
  0xd1   : > { %v589_v58 = vadd.f32 %v588_v54, %v499_v52 }
  0xd2   : > { %538 = vmatmul.bf16.gmra.mxu0 %v1150_v51 }
  0xd3   : > { %627 = vmatmul.bf16.gmra.mxu1 %v1154_v53 }
  0xd5   : > { %v1857_v55 = vpop.f32.mrf.mxu3 }
  0xd7   : > { %v501_v56 = vpop.f32.mrf.mxu0 }
  0xd8   : > { %v590_v57 = vpop.f32.mrf.mxu1 }
  0xd9   : > { %v591_v59 = vadd.f32 %v590_v57, %v501_v56 }
  0xdb   : > { %v664_v60 = vpack.c.bf16 %v591_v59, %v589_v58 }
  0xdd   : > { %764 = vmatmul.bf16.gmra.mxu2 %v664_v60  ;;  %v561_v1 = vpop.f32.mrf.mxu3 }
  0xdf   : > { %v504_v3 = vpop.f32.mrf.mxu0 }
  0xe0   : > { %v593_v5 = vpop.f32.mrf.mxu1 }
  0xe1   : > { %v594_v9 = vadd.f32 %v593_v5, %v504_v3 }
  0xe2   : > { %543 = vmatmul.bf16.gmra.mxu0 %v1158_v2 }
  0xe3   : > { %632 = vmatmul.bf16.gmra.mxu1 %v1162_v4 }
  0xe5   : > { %v1859_v6 = vpop.f32.mrf.mxu3 }
  0xe7   : > { %v506_v7 = vpop.f32.mrf.mxu0 }
  0xe8   : > { %v595_v8 = vpop.f32.mrf.mxu1 }
  0xe9   : > { %v596_v10 = vadd.f32 %v595_v8, %v506_v7 }
  0xeb   : > { %v665_v11 = vpack.c.bf16 %v596_v10, %v594_v9 }
  0xed   : > { %769 = vmatmul.bf16.gmra.mxu2 %v665_v11  ;;  %v566_v16 = vpop.f32.mrf.mxu3 }
  0xef   : > { %v509_v18 = vpop.f32.mrf.mxu0 }
  0xf0   : > { %v598_v20 = vpop.f32.mrf.mxu1 }
  0xf1   : > { %v599_v24 = vadd.f32 %v598_v20, %v509_v18 }
  0xf2   : > { %548 = vmatmul.bf16.gmra.mxu0 %v1166_v17 }
  0xf3   : > { %637 = vmatmul.bf16.gmra.mxu1 %v1170_v19 }
  0xf5   : > { %v569_v21 = vpop.f32.mrf.mxu3 }
  0xf7   : > { %v511_v22 = vpop.f32.mrf.mxu0 }
  0xf8   : > { %v600_v23 = vpop.f32.mrf.mxu1 }
  0xf9   : > { %v601_v25 = vadd.f32 %v600_v23, %v511_v22  ;;  %v1867_v23 = vld [vmem:[%s698_s28] ss:$0 sm:$0xff] }
  0xfb   : > { %v666_v26 = vpack.c.bf16 %v601_v25, %v599_v24 }
  0xfd   : > { %774 = vmatmul.bf16.gmra.mxu2 %v666_v26  ;;  %v571_v27 = vpop.f32.mrf.mxu3 }
  0xff   : > { %v514_v28 = vpop.f32.mrf.mxu0 }
 0x100   : > { %v603_v29 = vpop.f32.mrf.mxu1 }
 0x101   : > { %v604_v33 = vadd.f32 %v603_v29, %v514_v28 }
 0x105   : > { %v643_v30 = vpop.f32.mrf.mxu3 }
 0x106   : > { %v644_v37 = vadd.f32 %v643_v30, %v1852_v40 }
 0x107   : > { %v516_v31 = vpop.f32.mrf.mxu0 }
 0x108   : > { %v605_v32 = vpop.f32.mrf.mxu1 }
 0x109   : > { %v606_v34 = vadd.f32 %v605_v32, %v516_v31 }
 0x10b   : > { %v667_v35 = vpack.c.bf16 %v606_v34, %v604_v33 }
 0x10d   : > { %779 = vmatmul.bf16.gmra.mxu2 %v667_v35  ;;  %v645_v36 = vpop.f32.mrf.mxu3 }
 0x10e   : > { %v646_v38 = vadd.f32 %v645_v36, %v1854_v50 }
 0x10f   : > { %v519_v39 = vpop.f32.mrf.mxu0 }
 0x110   : > { %v675_v41 = vpack.c.bf16 %v646_v38, %v644_v37  ;;  %v608_v42 = vpop.f32.mrf.mxu1 }
 0x111   : > { %v609_v46 = vadd.f32 %v608_v42, %v519_v39 }
 0x112   : > { %819 = vmatmul.bf16.vlgmr.msra.gmra.mxu3 %v675_v41 }
 0x115   : > { %v648_v43 = vpop.f32.mrf.mxu3 }
 0x116   : > { %v649_v51 = vadd.f32 %v648_v43, %v1857_v55 }
 0x117   : > { %v521_v44 = vpop.f32.mrf.mxu0 }
 0x118   : > { %v610_v45 = vpop.f32.mrf.mxu1 }
 0x119   : > { %v611_v47 = vadd.f32 %v610_v45, %v521_v44 }
 0x11b   : > { %v668_v48 = vpack.c.bf16 %v611_v47, %v609_v46 }
 0x11d   : > { %784 = vmatmul.bf16.gmra.mxu2 %v668_v48  ;;  %v650_v49 = vpop.f32.mrf.mxu3 }
 0x11e   : > { %v651_v52 = vadd.f32 %v650_v49, %v561_v1 }
 0x11f   : > { %v524_v53 = vpop.f32.mrf.mxu0 }
 0x120   : > { %v613_v54 = vpop.f32.mrf.mxu1  ;;  %v676_v40 = vpack.c.bf16 %v651_v52, %v649_v51 }
 0x121   : > { %v614_v58 = vadd.f32 %v613_v54, %v524_v53 }
 0x122   : > { %824 = vmatmul.bf16.gmra.mxu3 %v676_v40 }
 0x125   : > { %v653_v50 = vpop.f32.mrf.mxu3 }
 0x126   : > { %v654_v62 = vadd.f32 %v653_v50, %v1859_v6 }
 0x127   : > { %v526_v56 = vpop.f32.mrf.mxu0 }
 0x128   : > { %v615_v57 = vpop.f32.mrf.mxu1 }
 0x129   : > { %v616_v59 = vadd.f32 %v615_v57, %v526_v56 }
 0x12b   : > { %v669_v60 = vpack.c.bf16 %v616_v59, %v614_v58 }
 0x12d   : > { %789 = vmatmul.bf16.gmra.mxu2 %v669_v60  ;;  %v655_v61 = vpop.f32.mrf.mxu3 }
 0x12e   : > { %v656_v63 = vadd.f32 %v655_v61, %v566_v16 }
 0x12f   : > { %v529_v0 = vpop.f32.mrf.mxu0 }
 0x130   : > { %v618_v2 = vpop.f32.mrf.mxu1  ;;  %v677_v3 = vpack.c.bf16 %v656_v63, %v654_v62 }
 0x131   : > { %v619_v5 = vadd.f32 %v618_v2, %v529_v0 }
 0x132   : > { %829 = vmatmul.bf16.gmra.mxu3 %v677_v3 }
 0x135   : > { %v658_v55 = vpop.f32.mrf.mxu3 }
 0x136   : > { %v659_v10 = vadd.f32 %v658_v55, %v569_v21 }
 0x137   : > { %v531_v1 = vpop.f32.mrf.mxu0 }
 0x138   : > { %v620_v4 = vpop.f32.mrf.mxu1 }
 0x139   : > { %v621_v7 = vadd.f32 %v620_v4, %v531_v1 }
 0x13b   : > { %v670_v8 = vpack.c.bf16 %v621_v7, %v619_v5 }
 0x13d   : > { %794 = vmatmul.bf16.gmra.mxu2 %v670_v8  ;;  %v660_v9 = vpop.f32.mrf.mxu3 }
 0x13e   : > { %v661_v11 = vadd.f32 %v660_v9, %v571_v27 }
 0x13f   : > { %v534_v12 = vpop.f32.mrf.mxu0 }
 0x140   : > { %v623_v13 = vpop.f32.mrf.mxu1  ;;  %v678_v6 = vpack.c.bf16 %v661_v11, %v659_v10 }
 0x141   : > { %v624_v16 = vadd.f32 %v623_v13, %v534_v12 }
 0x142   : > { %834 = vmatmul.bf16.gmra.mxu3 %v678_v6 }
 0x147   : > { %v536_v14 = vpop.f32.mrf.mxu0 }
 0x148   : > { %v625_v15 = vpop.f32.mrf.mxu1 }
 0x149   : > { %v626_v17 = vadd.f32 %v625_v15, %v536_v14 }
 0x14b   : > { %v671_v18 = vpack.c.bf16 %v626_v17, %v624_v16 }
 0x14d   : > { %799 = vmatmul.bf16.gmra.mxu2 %v671_v18 }
 0x14f   : > { %v539_v19 = vpop.f32.mrf.mxu0 }
 0x150   : > { %v628_v20 = vpop.f32.mrf.mxu1  ;;  %v760_v22 = vpop.f32.mrf.mxu2 }
 0x151   : > { %v1871_v21 = vadd.f32 %v1867_v23, %v760_v22  ;;  %v629_v27 = vadd.f32 %v628_v20, %v539_v19 }
 0x153   : > { %v840_v30 = vmax.f32 %v1871_v21, 0.0 }
 0x157   : > { %v541_v24 = vpop.f32.mrf.mxu0 }
 0x158   : > { %v630_v25 = vpop.f32.mrf.mxu1  ;;  %v762_v26 = vpop.f32.mrf.mxu2 }
 0x159   : > { %v631_v28 = vadd.f32 %v630_v25, %v541_v24  ;;  %v1874_v29 = vadd.f32 %v1867_v23, %v762_v26 }
 0x15b   : > { %v841_v31 = vmax.f32 %v1874_v29, 0.0  ;;  %v672_v32 = vpack.c.bf16 %v631_v28, %v629_v27 }
 0x15d   : > { %v1370_v33 = vpack.c.bf16 %v841_v31, %v840_v30  ;;  %804 = vmatmul.bf16.gmra.mxu2 %v672_v32 }
 0x15f   : > { %1371 = vst [vmem:[%s1878_s6] sm:$0xff] %v1370_v33   ;;  %v544_v34 = vpop.f32.mrf.mxu0 }
 0x160   : > { %v633_v35 = vpop.f32.mrf.mxu1  ;;  %v765_v36 = vpop.f32.mrf.mxu2 }
 0x161   : > { %v1882_v37 = vadd.f32 %v1867_v23, %v765_v36  ;;  %v634_v42 = vadd.f32 %v633_v35, %v544_v34 }
 0x163   : > { %v842_v45 = vmax.f32 %v1882_v37, 0.0 }
 0x167   : > { %v546_v38 = vpop.f32.mrf.mxu0 }
 0x168   : > { %v635_v39 = vpop.f32.mrf.mxu1  ;;  %v767_v41 = vpop.f32.mrf.mxu2 }
 0x169   : > { %v636_v43 = vadd.f32 %v635_v39, %v546_v38  ;;  %v1885_v44 = vadd.f32 %v1867_v23, %v767_v41 }
 0x16b   : > { %v843_v46 = vmax.f32 %v1885_v44, 0.0  ;;  %v673_v47 = vpack.c.bf16 %v636_v43, %v634_v42 }
 0x16d   : > { %v1375_v48 = vpack.c.bf16 %v843_v46, %v842_v45  ;;  %809 = vmatmul.bf16.gmra.mxu2 %v673_v47 }
 0x16f   : > { %1447 = vst [vmem:[%s1878_s6 + $0x8] sm:$0xff] %v1375_v48   ;;  %v549_v49 = vpop.f32.mrf.mxu0 }
 0x170   : > { %v638_v51 = vpop.f32.mrf.mxu1  ;;  %v770_v52 = vpop.f32.mrf.mxu2 }
 0x171   : > { %v1891_v53 = vadd.f32 %v1867_v23, %v770_v52  ;;  %v639_v56 = vadd.f32 %v638_v51, %v549_v49 }
 0x173   : > { %v844_v59 = vmax.f32 %v1891_v53, 0.0 }
 0x177   : > { %v551_v54 = vpop.f32.mrf.mxu0 }
 0x178   : > { %v640_v40 = vpop.f32.mrf.mxu1  ;;  %v772_v50 = vpop.f32.mrf.mxu2 }
 0x179   : > { %v641_v57 = vadd.f32 %v640_v40, %v551_v54  ;;  %v1894_v58 = vadd.f32 %v1867_v23, %v772_v50 }
 0x17b   : > { %v845_v60 = vmax.f32 %v1894_v58, 0.0  ;;  %v674_v61 = vpack.c.bf16 %v641_v57, %v639_v56 }
 0x17d   : > { %v1380_v62 = vpack.c.bf16 %v845_v60, %v844_v59  ;;  %814 = vmatmul.bf16.gmra.mxu2 %v674_v61 }
 0x17f   : > { %1448 = vst [vmem:[%s1878_s6 + $0x10] sm:$0xff] %v1380_v62  }
 0x180   : > { %v775_v63 = vpop.f32.mrf.mxu2 }
 0x181   : > { %v1900_v0 = vadd.f32 %v1867_v23, %v775_v63 }
 0x183   : > { %v846_v55 = vmax.f32 %v1900_v0, 0.0 }
 0x188   : > { %v777_v2 = vpop.f32.mrf.mxu2 }
 0x189   : > { %v1903_v3 = vadd.f32 %v1867_v23, %v777_v2 }
 0x18b   : > { %v847_v1 = vmax.f32 %v1903_v3, 0.0 }
 0x18d   : > { %v1385_v4 = vpack.c.bf16 %v847_v1, %v846_v55 }
 0x18f   : > { %1449 = vst [vmem:[%s1878_s6 + $0x18] sm:$0xff] %v1385_v4  }
 0x190   : > { %v780_v5 = vpop.f32.mrf.mxu2 }
 0x191   : > { %v1909_v8 = vadd.f32 %v1867_v23, %v780_v5 }
 0x193   : > { %v848_v11 = vmax.f32 %v1909_v8, 0.0 }
 0x195   : > { %v820_v7 = vpop.f32.mrf.mxu3 }
 0x196   : > { %v1917_v13 = vadd.f32 %v1867_v23, %v820_v7 }
 0x198   : > { %v782_v9 = vpop.f32.mrf.mxu2  ;;  %v864_v16 = vmax.f32 %v1917_v13, 0.0 }
 0x199   : > { %v1912_v10 = vadd.f32 %v1867_v23, %v782_v9 }
 0x19b   : > { %v849_v12 = vmax.f32 %v1912_v10, 0.0 }
 0x19d   : > { %v1390_v6 = vpack.c.bf16 %v849_v12, %v848_v11  ;;  %v822_v14 = vpop.f32.mrf.mxu3 }
 0x19e   : > { %v1920_v15 = vadd.f32 %v1867_v23, %v822_v14 }
 0x19f   : > { %1450 = vst [vmem:[%s1878_s6 + $0x20] sm:$0xff] %v1390_v6  }
 0x1a0   : > { %v865_v17 = vmax.f32 %v1920_v15, 0.0  ;;  %v785_v18 = vpop.f32.mrf.mxu2 }
 0x1a1   : > { %v1927_v22 = vadd.f32 %v1867_v23, %v785_v18 }
 0x1a2   : > { %v1430_v19 = vpack.c.bf16 %v865_v17, %v864_v16 }
 0x1a3   : > { %v850_v26 = vmax.f32 %v1927_v22, 0.0 }
 0x1a4   : > { %1458 = vst [vmem:[%s1878_s6 + $0x60] sm:$0xff] %v1430_v19  }
 0x1a5   : > { %v825_v20 = vpop.f32.mrf.mxu3 }
 0x1a6   : > { %v1935_v28 = vadd.f32 %v1867_v23, %v825_v20 }
 0x1a8   : > { %v787_v24 = vpop.f32.mrf.mxu2  ;;  %v866_v33 = vmax.f32 %v1935_v28, 0.0 }
 0x1a9   : > { %v1930_v25 = vadd.f32 %v1867_v23, %v787_v24 }
 0x1ab   : > { %v851_v27 = vmax.f32 %v1930_v25, 0.0 }
 0x1ad   : > { %v1395_v30 = vpack.c.bf16 %v851_v27, %v850_v26  ;;  %v827_v31 = vpop.f32.mrf.mxu3 }
 0x1ae   : > { %v1938_v32 = vadd.f32 %v1867_v23, %v827_v31 }
 0x1af   : > { %1451 = vst [vmem:[%s1878_s6 + $0x28] sm:$0xff] %v1395_v30  }
 0x1b0   : > { %v867_v34 = vmax.f32 %v1938_v32, 0.0  ;;  %v790_v35 = vpop.f32.mrf.mxu2 }
 0x1b1   : > { %v1945_v39 = vadd.f32 %v1867_v23, %v790_v35 }
 0x1b2   : > { %v1435_v36 = vpack.c.bf16 %v867_v34, %v866_v33 }
 0x1b3   : > { %v852_v43 = vmax.f32 %v1945_v39, 0.0 }
 0x1b4   : > { %1459 = vst [vmem:[%s1878_s6 + $0x68] sm:$0xff] %v1435_v36  }
 0x1b5   : > { %v830_v38 = vpop.f32.mrf.mxu3 }
 0x1b6   : > { %v1953_v46 = vadd.f32 %v1867_v23, %v830_v38 }
 0x1b8   : > { %v792_v41 = vpop.f32.mrf.mxu2  ;;  %v868_v51 = vmax.f32 %v1953_v46, 0.0 }
 0x1b9   : > { %v1948_v42 = vadd.f32 %v1867_v23, %v792_v41 }
 0x1bb   : > { %v853_v45 = vmax.f32 %v1948_v42, 0.0 }
 0x1bd   : > { %v1400_v47 = vpack.c.bf16 %v853_v45, %v852_v43  ;;  %v832_v48 = vpop.f32.mrf.mxu3 }
 0x1be   : > { %v1956_v49 = vadd.f32 %v1867_v23, %v832_v48 }
 0x1bf   : > { %1452 = vst [vmem:[%s1878_s6 + $0x30] sm:$0xff] %v1400_v47  }
 0x1c0   : > { %v869_v52 = vmax.f32 %v1956_v49, 0.0  ;;  %v795_v54 = vpop.f32.mrf.mxu2 }
 0x1c1   : > { %v796_v56 = vadd.f32 %v1867_v23, %v795_v54 }
 0x1c2   : > { %v1440_v40 = vpack.c.bf16 %v869_v52, %v868_v51 }
 0x1c3   : > { %v854_v60 = vmax.f32 %v796_v56, 0.0 }
 0x1c4   : > { %1460 = vst [vmem:[%s1878_s6 + $0x70] sm:$0xff] %v1440_v40  }
 0x1c5   : > { %v835_v50 = vpop.f32.mrf.mxu3 }
 0x1c6   : > { %v1965_v62 = vadd.f32 %v1867_v23, %v835_v50 }
 0x1c8   : > { %v797_v57 = vpop.f32.mrf.mxu2  ;;  %v870_v1 = vmax.f32 %v1965_v62, 0.0 }
 0x1c9   : > { %v798_v59 = vadd.f32 %v1867_v23, %v797_v57 }
 0x1cb   : > { %v855_v61 = vmax.f32 %v798_v59, 0.0 }
 0x1cd   : > { %v1405_v63 = vpack.c.bf16 %v855_v61, %v854_v60  ;;  %v837_v2 = vpop.f32.mrf.mxu3 }
 0x1ce   : > { %v1968_v55 = vadd.f32 %v1867_v23, %v837_v2 }
 0x1cf   : > { %1453 = vst [vmem:[%s1878_s6 + $0x38] sm:$0xff] %v1405_v63  }
 0x1d0   : > { %v871_v4 = vmax.f32 %v1968_v55, 0.0  ;;  %v800_v5 = vpop.f32.mrf.mxu2 }
 0x1d1   : > { %v801_v9 = vadd.f32 %v1867_v23, %v800_v5 }
 0x1d2   : > { %v1445_v7 = vpack.c.bf16 %v871_v4, %v870_v1 }
 0x1d3   : > { %v856_v6 = vmax.f32 %v801_v9, 0.0 }
 0x1d4   : > { %1461 = vst [vmem:[%s1878_s6 + $0x78] sm:$0xff] %v1445_v7  }
 0x1d8   : > { %v802_v11 = vpop.f32.mrf.mxu2 }
 0x1d9   : > { %v803_v12 = vadd.f32 %v1867_v23, %v802_v11 }
 0x1db   : > { %v857_v14 = vmax.f32 %v803_v12, 0.0 }
 0x1dd   : > { %v1410_v16 = vpack.c.bf16 %v857_v14, %v856_v6 }
 0x1df   : > { %1454 = vst [vmem:[%s1878_s6 + $0x40] sm:$0xff] %v1410_v16  }
 0x1e0   : > { %v805_v17 = vpop.f32.mrf.mxu2 }
 0x1e1   : > { %v806_v18 = vadd.f32 %v1867_v23, %v805_v17 }
 0x1e3   : > { %v858_v24 = vmax.f32 %v806_v18, 0.0 }
 0x1e8   : > { %v807_v19 = vpop.f32.mrf.mxu2 }
 0x1e9   : > { %v808_v20 = vadd.f32 %v1867_v23, %v807_v19 }
 0x1eb   : > { %v859_v26 = vmax.f32 %v808_v20, 0.0 }
 0x1ed   : > { %v1415_v27 = vpack.c.bf16 %v859_v26, %v858_v24 }
 0x1ef   : > { %1455 = vst [vmem:[%s1878_s6 + $0x48] sm:$0xff] %v1415_v27  }
 0x1f0   : > { %v810_v30 = vpop.f32.mrf.mxu2 }
 0x1f1   : > { %v811_v31 = vadd.f32 %v1867_v23, %v810_v30 }
 0x1f3   : > { %v860_v35 = vmax.f32 %v811_v31, 0.0 }
 0x1f8   : > { %v812_v33 = vpop.f32.mrf.mxu2 }
 0x1f9   : > { %v813_v34 = vadd.f32 %v1867_v23, %v812_v33 }
 0x1fb   : > { %v861_v36 = vmax.f32 %v813_v34, 0.0 }
 0x1fd   : > { %v1420_v38 = vpack.c.bf16 %v861_v36, %v860_v35 }
 0x1ff   : > { %1456 = vst [vmem:[%s1878_s6 + $0x50] sm:$0xff] %v1420_v38  }
 0x200   : > { %v815_v41 = vpop.f32.mrf.mxu2 }
 0x201   : > { %v816_v43 = vadd.f32 %v1867_v23, %v815_v41 }
 0x203   : > { %v862_v48 = vmax.f32 %v816_v43, 0.0 }
 0x208   : > { %v817_v45 = vpop.f32.mrf.mxu2 }
 0x209   : > { %v818_v47 = vadd.f32 %v1867_v23, %v817_v45 }
 0x20b   : > { %v863_v51 = vmax.f32 %v818_v47, 0.0  ;;  %943 = sbr.rel (%p1303_p6) target bundleno = 563 (0x233), region = 52 }
 0x20d   : > { %v1425_v52 = vpack.c.bf16 %v863_v51, %v862_v48 }
 0x20f   : > { %1457 = vst [vmem:[%s1878_s6 + $0x58] sm:$0xff] %v1425_v52  }
 0x210   : > { %944 = vst [vmem:[#allocation4] sm:$0xff] %v1871_v21 }
 0x211   : > { %945 = vst [vmem:[#allocation4 + $0x8] sm:$0xff] %v1874_v29 }
 0x212   : > { %946 = vst [vmem:[#allocation4 + $0x10] sm:$0xff] %v1882_v37 }
 0x213   : > { %947 = vst [vmem:[#allocation4 + $0x18] sm:$0xff] %v1885_v44 }
 0x214   : > { %948 = vst [vmem:[#allocation4 + $0x20] sm:$0xff] %v1891_v53 }
 0x215   : > { %949 = vst [vmem:[#allocation4 + $0x28] sm:$0xff] %v1894_v58 }
 0x216   : > { %950 = vst [vmem:[#allocation4 + $0x30] sm:$0xff] %v1900_v0 }
 0x217   : > { %951 = vst [vmem:[#allocation4 + $0x38] sm:$0xff] %v1903_v3 }
 0x218   : > { %952 = vst [vmem:[#allocation4 + $0x40] sm:$0xff] %v1909_v8 }
 0x219   : > { %953 = vst [vmem:[#allocation4 + $0x48] sm:$0xff] %v1912_v10 }
 0x21a   : > { %954 = vst [vmem:[#allocation4 + $0x50] sm:$0xff] %v1927_v22 }
 0x21b   : > { %955 = vst [vmem:[#allocation4 + $0x58] sm:$0xff] %v1930_v25 }
 0x21c   : > { %956 = vst [vmem:[#allocation4 + $0x60] sm:$0xff] %v1945_v39 }
 0x21d   : > { %957 = vst [vmem:[#allocation4 + $0x68] sm:$0xff] %v1948_v42 }
 0x21e   : > { %958 = vst [vmem:[#allocation4 + $0x70] sm:$0xff] %v796_v56 }
 0x21f   : > { %959 = vst [vmem:[#allocation4 + $0x78] sm:$0xff] %v798_v59 }
 0x220   : > { %960 = vst [vmem:[#allocation4 + $0x80] sm:$0xff] %v801_v9 }
 0x221   : > { %961 = vst [vmem:[#allocation4 + $0x88] sm:$0xff] %v803_v12 }
 0x222   : > { %962 = vst [vmem:[#allocation4 + $0x90] sm:$0xff] %v806_v18 }
 0x223   : > { %963 = vst [vmem:[#allocation4 + $0x98] sm:$0xff] %v808_v20 }
 0x224   : > { %964 = vst [vmem:[#allocation4 + $0xa0] sm:$0xff] %v811_v31 }
 0x225   : > { %965 = vst [vmem:[#allocation4 + $0xa8] sm:$0xff] %v813_v34 }
 0x226   : > { %966 = vst [vmem:[#allocation4 + $0xb0] sm:$0xff] %v816_v43 }
 0x227   : > { %967 = vst [vmem:[#allocation4 + $0xb8] sm:$0xff] %v818_v47 }
 0x228   : > { %968 = vst [vmem:[#allocation4 + $0xc0] sm:$0xff] %v1917_v13 }
 0x229   : > { %969 = vst [vmem:[#allocation4 + $0xc8] sm:$0xff] %v1920_v15 }
 0x22a   : > { %970 = vst [vmem:[#allocation4 + $0xd0] sm:$0xff] %v1935_v28 }
 0x22b   : > { %971 = vst [vmem:[#allocation4 + $0xd8] sm:$0xff] %v1938_v32 }
 0x22c   : > { %972 = vst [vmem:[#allocation4 + $0xe0] sm:$0xff] %v1953_v46 }
 0x22d   : > { %973 = vst [vmem:[#allocation4 + $0xe8] sm:$0xff] %v1956_v49 }
 0x22e   : > { %974 = vst [vmem:[#allocation4 + $0xf0] sm:$0xff] %v1965_v62 }
 0x22f   : > { %975 = vst [vmem:[#allocation4 + $0xf8] sm:$0xff] %v1968_v55 }
 0x230   : > { %990 = dma.vmem_to_hbm [thread:$0]  %s986_s7, 4096, %s988_s10, [#allocation5 + $0x2] }
 0x231   : > { %1712 = dma.done.wait [#allocation5 + $0x2], 4096 }
 0x232   : > { %1713 = vsyncadd [#allocation5 + $0x2], 4294963200 }
 0x233 PF: > { %s16_s17 = sadd.s32 1, %s1724_s17   ;;  %s2027_s15 = smov %s1720_s16 }
 0x234   : > { %p13_p7 = scmp.ge.s32.totalorder %s16_s17, 5   ;;  %s2028_s16 = smov %s2030_s19 }
 0x236   :  { %15 = sbr.rel (!%p13_p7) target bundleno = 3 (0x3), region = 78 }
 0x23b   :  { %994 = vsyncpa [#allocation7], 1 }
 0x23c   :  { %996 = vsyncpa [#allocation7 + $0x1], 1 }
 0x23d   :  { %997 = vsyncpa [#allocation9], 1 }
 0x23e   :  { %998 = vsyncmov [#allocation5] }
 0x241   :  { %s999_s11 = vpop.sfrf %998 }
 0x242   :  { %p1304_p8 = scmp.ne.s32.totalorder %s999_s11, 0 }
 0x244   :  { %1003 = shalt.err (%p1304_p8)  }
 0x245   :  { %1005 = vsyncmov [#allocation5 + $0x1] }
 0x248   :  { %s1006_s12 = vpop.sfrf %1005 }
 0x249   :  { %p1305_p9 = scmp.ne.s32.totalorder %s1006_s12, 0 }
 0x24b   :  { %1010 = shalt.err (%p1305_p9)  }
 0x24c   :  { %1012 = vsyncmov [#allocation5 + $0x2] }
 0x24f   :  { %s1013_s13 = vpop.sfrf %1012 }
 0x250   :  { %p1306_p10 = scmp.ne.s32.totalorder %s1013_s13, 0 }
 0x252   :  { %1017 = shalt.err (%p1306_p10)  }

</bundles_post_ra>
